<compile_context>
chip_gen: v7x
topology: tpu7x:2x2x1
jax: 0.10.0
libtpu: 0.0.40
codegen_flags: <defaults>
</compile_context>

<pallas_src>
import functools

import jax
import jax.numpy as jnp
from jax.experimental import pallas as pl
from jax.experimental.pallas import tpu as pltpu


def _round_up(a, b):
    return ((a + b - 1) // b) * b


def _convlstm_kernel(w_ref, b_ref, p_ref, c_ref, h_out_ref, c_out_ref, *,
                     hidden):
    """One tile of columns (batch*spatial positions) per grid step.

    w_ref     : (4*Ch, Kp)     packed conv weight, bf16
    b_ref     : (4*Ch, 1)      conv bias, f32
    p_ref     : (Kp, tile_n)   im2col patches, bf16
    c_ref     : (Ch, tile_n)   current cell state
    h_out_ref : (Ch, tile_n)
    c_out_ref : (Ch, tile_n)   (float32)
    """
    # Single MXU matmul with f32 accumulation; bias added in f32 afterwards.
    gates = jnp.dot(w_ref[...], p_ref[...],
                    preferred_element_type=jnp.float32)        # (4*Ch, tile_n)
    gates = gates + b_ref[...]                                 # broadcast lanes

    # Gate quarters are 32 rows each -> 8-sublane aligned f32 slices (cheap).
    i = jax.nn.sigmoid(gates[0 * hidden:1 * hidden])
    f = jax.nn.sigmoid(gates[1 * hidden:2 * hidden])
    o = jax.nn.sigmoid(gates[2 * hidden:3 * hidden])
    g = jnp.tanh(gates[3 * hidden:4 * hidden])

    c_cur = c_ref[...].astype(jnp.float32)
    c_next = f * c_cur + i * g
    h_next = o * jnp.tanh(c_next)

    h_out_ref[...] = h_next.astype(h_out_ref.dtype)
    c_out_ref[...] = c_next.astype(c_out_ref.dtype)


def pack_conv_lstm_params(weight_oihw, bias):
    """OIHW conv weight -> (4*Ch, Kp) bf16 matmul weight + (4*Ch, 1) f32 bias.

    K ordering is (ky, kx, c); hoist this out of any time loop.
    """
    Cout, C, KH, KW = weight_oihw.shape
    K = KH * KW * C
    Kp = _round_up(K, 128)
    w_pack = jnp.transpose(weight_oihw, (0, 2, 3, 1)).reshape(Cout, K)
    w_pack = jnp.pad(w_pack, ((0, 0), (0, Kp - K))).astype(jnp.bfloat16)
    b_col = bias.reshape(Cout, 1).astype(jnp.float32)
    return w_pack, b_col


def conv_lstm_cell_nchw(x, h_cur, c_cur, weight_oihw, bias, *,
                        max_tile_n=2048):
    """NCHW front-end matching the PyTorch module.

    x           : (B, Cin, H, W)
    h_cur, c_cur: (B, Ch, H, W)
    weight_oihw : (4*Ch, Cin+Ch, KH, KW)   (PyTorch Conv2d layout)
    bias        : (4*Ch,)
    Returns (h_next, c_next); h_next has x.dtype, c_next is float32.
    """
    B, Cin, H, W = x.shape
    Ch = h_cur.shape[1]
    Cout, C, KH, KW = weight_oihw.shape
    assert C == Cin + Ch and Cout == 4 * Ch
    assert KH % 2 == 1 and KW % 2 == 1, "SAME-padding scheme assumes odd kernel"
    ph, pw = KH // 2, KW // 2

    M = B * H * W                     # matmul column (lane) dimension
    K = KH * KW * C                   # contraction dim
    Kp = _round_up(K, 128)            # lane-dense MXU operands

    # Pad columns up to a 128-multiple so stores are always full-width vst;
    # if still large, tile columns (Mp then a multiple of tile_n).
    Mp = _round_up(M, 128)
    if Mp > max_tile_n:
        tile_n = max_tile_n
        Mp = _round_up(Mp, tile_n)
    else:
        tile_n = Mp
    n_tiles = Mp // tile_n

    # ---- packed weight + f32 bias column (hoist out of any time loop).
    w_pack, b_col = pack_conv_lstm_params(weight_oihw, bias)

    # ---- im2col, channel-first: one small transpose of (B,C,H,W), then the
    #      9 taps concatenate straight into (K, M) with no K-major transpose.
    comb = jnp.concatenate([x, h_cur], axis=1)                  # (B, C, H, W)
    comb_cf = jnp.transpose(comb, (1, 0, 2, 3))                 # (C, B, H, W)
    comb_cf = jnp.pad(comb_cf, ((0, 0), (0, 0), (ph, ph), (pw, pw)))
    taps = [comb_cf[:, :, ky:ky + H, kx:kx + W]
            for ky in range(KH) for kx in range(KW)]
    patches = jnp.concatenate(taps, axis=0).reshape(K, M)       # (ky,kx,c)-major
    patches = jnp.pad(patches, ((0, Kp - K), (0, Mp - M))).astype(jnp.bfloat16)

    # ---- cell state transposed to lane-dense (Ch, B*H*W).
    c_flat = jnp.transpose(c_cur, (1, 0, 2, 3)).reshape(Ch, M)
    c_flat = jnp.pad(c_flat, ((0, 0), (0, Mp - M)))

    kernel = functools.partial(_convlstm_kernel, hidden=Ch)
    h_flat, c_next_flat = pl.pallas_call(
        kernel,
        out_shape=(jax.ShapeDtypeStruct((Ch, Mp), x.dtype),
                   jax.ShapeDtypeStruct((Ch, Mp), jnp.float32)),
        grid_spec=pltpu.PrefetchScalarGridSpec(
            num_scalar_prefetch=0,
            grid=(n_tiles,),
            in_specs=[
                pl.BlockSpec((Cout, Kp), lambda i: (0, 0)),     # packed weight
                pl.BlockSpec((Cout, 1), lambda i: (0, 0)),      # f32 bias col
                pl.BlockSpec((Kp, tile_n), lambda i: (0, i)),   # im2col patches
                pl.BlockSpec((Ch, tile_n), lambda i: (0, i)),   # c_cur
            ],
            out_specs=[
                pl.BlockSpec((Ch, tile_n), lambda i: (0, i)),   # h_next
                pl.BlockSpec((Ch, tile_n), lambda i: (0, i)),   # c_next
            ],
        ),
        compiler_params=pltpu.CompilerParams(
            dimension_semantics=("parallel",)),
    )(w_pack, b_col, patches, c_flat)

    def unflat(t):
        return jnp.transpose(t[:, :M].reshape(Ch, B, H, W), (1, 0, 2, 3))

    return unflat(h_flat), unflat(c_next_flat)


def _reference_nchw(x, h_cur, c_cur, weight_oihw, bias):
    """Pure-JAX f32 reference (lax conv) for correctness checking."""
    combined = jnp.concatenate([x, h_cur], axis=1)
    gates = jax.lax.conv_general_dilated(
        combined, weight_oihw, window_strides=(1, 1), padding="SAME",
        dimension_numbers=("NCHW", "OIHW", "NCHW"))
    gates = gates + bias[None, :, None, None]
    cc_i, cc_f, cc_o, cc_g = jnp.split(gates, 4, axis=1)
    i = jax.nn.sigmoid(cc_i)
    f = jax.nn.sigmoid(cc_f)
    o = jax.nn.sigmoid(cc_o)
    g = jnp.tanh(cc_g)
    c_next = f * c_cur + i * g
    h_next = o * jnp.tanh(c_next)
    return h_next, c_next


if __name__ == "__main__":
    # Module hyperparameters: ConvLSTMCell((16,16), 4, 32, (3,3), bias=True)
    B, Hs, Ws = 2, 16, 16
    input_dim, hidden_dim = 4, 32
    KH, KW = 3, 3
    C = input_dim + hidden_dim        # 36
    Cout = 4 * hidden_dim             # 128

    key = jax.random.PRNGKey(0)
    kx, kh, kc, kw, kb = jax.random.split(key, 5)

    # Deterministic synthetic parameters (OIHW, like PyTorch) and NCHW states.
    x = jax.random.normal(kx, (B, input_dim, Hs, Ws), jnp.float32)
    h0 = jax.random.normal(kh, (B, hidden_dim, Hs, Ws), jnp.float32)
    c0 = jax.random.normal(kc, (B, hidden_dim, Hs, Ws), jnp.float32)
    weight = jax.random.normal(kw, (Cout, C, KH, KW), jnp.float32) * 0.05
    bias = jax.random.normal(kb, (Cout,), jnp.float32) * 0.05

    h_next, c_next = jax.jit(conv_lstm_cell_nchw)(x, h0, c0, weight, bias)
    jax.block_until_ready((h_next, c_next))

    # Sanity check vs. the pure-f32 reference.  The kernel feeds bf16 operands
    # to the MXU (f32 accumulation + f32 bias), so tolerance is loosened.
    h_ref, c_ref = _reference_nchw(x, h0, c0, weight, bias)
    assert jnp.allclose(h_next, h_ref, atol=5e-2, rtol=5e-2), \
        float(jnp.max(jnp.abs(h_next - h_ref)))
    assert jnp.allclose(c_next, c_ref, atol=5e-2, rtol=5e-2), \
        float(jnp.max(jnp.abs(c_next - c_ref)))

    print("KERNEL_OK")
</pallas_src>

<mosaic_0001>
module attributes {stable_mosaic.version = 11 : i64} {
  func.func @_convlstm_kernel(%arg0: i32, %arg1: memref<128x384xbf16, #tpu.memory_space<vmem>>, %arg2: memref<128x1xf32, #tpu.memory_space<vmem>>, %arg3: memref<384x512xbf16, #tpu.memory_space<vmem>>, %arg4: memref<32x512xf32, #tpu.memory_space<vmem>>, %arg5: memref<32x512xf32, #tpu.memory_space<vmem>>, %arg6: memref<32x512xf32, #tpu.memory_space<vmem>>) attributes {dimension_semantics = [#tpu.dimension_semantics<parallel>], iteration_bounds = array<i64: 1>, scalar_prefetch = 0 : i64, scratch_operands = 0 : i64, tpu.core_type = #tpu.core_type<tc>, window_params = [{pipeline_mode = #tpu.pipeline_mode<synchronous>, transform_indices = @transform_0, window_bounds = array<i64: 128, 384>}, {pipeline_mode = #tpu.pipeline_mode<synchronous>, transform_indices = @transform_1, window_bounds = array<i64: 128, 1>}, {transform_indices = @transform_2, window_bounds = array<i64: 384, 512>}, {transform_indices = @transform_3, window_bounds = array<i64: 32, 512>}, {transform_indices = @transform_4, window_bounds = array<i64: 32, 512>}, {transform_indices = @transform_5, window_bounds = array<i64: 32, 512>}]} {
    %c0 = arith.constant 0 : index
    %c0_0 = arith.constant 0 : index
    %0 = vector.load %arg1[%c0, %c0_0] : memref<128x384xbf16, #tpu.memory_space<vmem>>, vector<128x384xbf16>
    %c0_1 = arith.constant 0 : index
    %c0_2 = arith.constant 0 : index
    %1 = vector.load %arg3[%c0_1, %c0_2] : memref<384x512xbf16, #tpu.memory_space<vmem>>, vector<384x512xbf16>
    %cst = arith.constant dense<0.000000e+00> : vector<128x512xf32>
    %2 = tpu.matmul %0, %1, %cst {dimension_numbers = #tpu.dot_dimension_numbers<[1], [0], [0], [1], [0, 0, 1, 1], [], []>} : vector<128x384xbf16>, vector<384x512xbf16>, vector<128x512xf32> -> vector<128x512xf32>
    %c0_3 = arith.constant 0 : index
    %c0_4 = arith.constant 0 : index
    %3 = vector.load %arg2[%c0_3, %c0_4] : memref<128x1xf32, #tpu.memory_space<vmem>>, vector<128x1xf32>
    %4 = vector.broadcast %3 : vector<128x1xf32> to vector<128x512xf32>
    %5 = arith.addf %2, %4 : vector<128x512xf32>
    %6 = vector.extract_strided_slice %5 {offsets = [0, 0], sizes = [32, 512], strides = [1, 1]} : vector<128x512xf32> to vector<32x512xf32>
    %7 = arith.negf %6 : vector<32x512xf32>
    %8 = math.exp %7 : vector<32x512xf32>
    %cst_5 = arith.constant 1.000000e+00 : f32
    %9 = vector.broadcast %cst_5 : f32 to vector<32x512xf32>
    %10 = arith.addf %9, %8 : vector<32x512xf32>
    %11 = arith.divf %9, %10 : vector<32x512xf32>
    %12 = vector.extract_strided_slice %5 {offsets = [32, 0], sizes = [32, 512], strides = [1, 1]} : vector<128x512xf32> to vector<32x512xf32>
    %13 = arith.negf %12 : vector<32x512xf32>
    %14 = math.exp %13 : vector<32x512xf32>
    %cst_6 = arith.constant 1.000000e+00 : f32
    %15 = vector.broadcast %cst_6 : f32 to vector<32x512xf32>
    %16 = arith.addf %15, %14 : vector<32x512xf32>
    %17 = arith.divf %15, %16 : vector<32x512xf32>
    %18 = vector.extract_strided_slice %5 {offsets = [64, 0], sizes = [32, 512], strides = [1, 1]} : vector<128x512xf32> to vector<32x512xf32>
    %19 = arith.negf %18 : vector<32x512xf32>
    %20 = math.exp %19 : vector<32x512xf32>
    %cst_7 = arith.constant 1.000000e+00 : f32
    %21 = vector.broadcast %cst_7 : f32 to vector<32x512xf32>
    %22 = arith.addf %21, %20 : vector<32x512xf32>
    %23 = arith.divf %21, %22 : vector<32x512xf32>
    %24 = vector.extract_strided_slice %5 {offsets = [96, 0], sizes = [32, 512], strides = [1, 1]} : vector<128x512xf32> to vector<32x512xf32>
    %25 = math.tanh %24 : vector<32x512xf32>
    %c0_8 = arith.constant 0 : index
    %c0_9 = arith.constant 0 : index
    %26 = vector.load %arg4[%c0_8, %c0_9] : memref<32x512xf32, #tpu.memory_space<vmem>>, vector<32x512xf32>
    %27 = arith.mulf %17, %26 : vector<32x512xf32>
    %28 = arith.mulf %11, %25 : vector<32x512xf32>
    %29 = arith.addf %27, %28 : vector<32x512xf32>
    %30 = math.tanh %29 : vector<32x512xf32>
    %31 = arith.mulf %23, %30 : vector<32x512xf32>
    %c0_10 = arith.constant 0 : index
    %c0_11 = arith.constant 0 : index
    %32 = vector.load %arg5[%c0_10, %c0_11] : memref<32x512xf32, #tpu.memory_space<vmem>>, vector<32x512xf32>
    tpu.vector_store %arg5[%c0_10, %c0_11], %31 {strides = array<i32>} : memref<32x512xf32, #tpu.memory_space<vmem>>, vector<32x512xf32>,
    %c0_12 = arith.constant 0 : index
    %c0_13 = arith.constant 0 : index
    %33 = vector.load %arg6[%c0_12, %c0_13] : memref<32x512xf32, #tpu.memory_space<vmem>>, vector<32x512xf32>
    tpu.vector_store %arg6[%c0_12, %c0_13], %29 {strides = array<i32>} : memref<32x512xf32, #tpu.memory_space<vmem>>, vector<32x512xf32>,
    return
  }
  func.func @transform_0(%arg0: i32) -> (i32, i32) {
    %c0_i32 = arith.constant 0 : i32
    %c0_i32_0 = arith.constant 0 : i32
    %c0_i32_1 = arith.constant 0 : i32
    return %c0_i32, %c0_i32_0 : i32, i32
  }
  func.func @transform_1(%arg0: i32) -> (i32, i32) {
    %c0_i32 = arith.constant 0 : i32
    %c0_i32_0 = arith.constant 0 : i32
    %c0_i32_1 = arith.constant 0 : i32
    return %c0_i32, %c0_i32_0 : i32, i32
  }
  func.func @transform_2(%arg0: i32) -> (i32, i32) {
    %c0_i32 = arith.constant 0 : i32
    %c0_i32_0 = arith.constant 0 : i32
    return %c0_i32, %arg0 : i32, i32
  }
  func.func @transform_3(%arg0: i32) -> (i32, i32) {
    %c0_i32 = arith.constant 0 : i32
    %c0_i32_0 = arith.constant 0 : i32
    return %c0_i32, %arg0 : i32, i32
  }
  func.func @transform_4(%arg0: i32) -> (i32, i32) {
    %c0_i32 = arith.constant 0 : i32
    %c0_i32_0 = arith.constant 0 : i32
    return %c0_i32, %arg0 : i32, i32
  }
  func.func @transform_5(%arg0: i32) -> (i32, i32) {
    %c0_i32 = arith.constant 0 : i32
    %c0_i32_0 = arith.constant 0 : i32
    return %c0_i32, %arg0 : i32, i32
  }
}

</mosaic_0001>

<bundles_post_ra>
// kernel: conv_lstm_cell_nchw.1
= control target key start
LH: loop header
LB: loop body
LE: loop exit
PB: predicated region body
PF: predicated region fallthrough
CT: control target
= control target key end

     0   :  { %v2475_v1 = vmov 0   ;;  %s3337_s2 = inlined_call_operand.vmem [shape: bf16[384,512], index: 2, kind: input, shape index: {}]   ;;  %s3338_s0 = inlined_call_operand.vmem [shape: bf16[128,384], index: 0, kind: input, shape index: {}]   ;;  %s3339_s1 = inlined_call_operand.vmem [shape: f32[128,1], index: 1, kind: input, shape index: {}]   ;;  %s3340_s3 = inlined_call_operand.vmem [shape: f32[32,512], index: 3, kind: input, shape index: {}]   ;;  %s3341_s5 = inlined_call_operand.vmem [shape: f32[32,512], index: 5, kind: output, shape index: {1}]   ;;  %s3342_s4 = inlined_call_operand.vmem [shape: f32[32,512], index: 4, kind: output, shape index: {0}]  }
   0x1   :  { %v2043_v0 = vld [vmem:[%s3337_s2 + $0x4] ss:$16 sps:$4 sm:$0xff]   ;;  %2041 = vset.pattern.permute.xlu0 %v2475_v1  ;;  %2042 = vset.pattern.permute.xlu1 %v2475_v1  ;;  %v2045_v2 = vld [vmem:[%s3337_s2 + $0xc] ss:$16 sps:$4 sm:$0xff]   ;;  %v2047_v3 = vld [vmem:[%s3337_s2] ss:$16 sps:$4 sm:$0xff]  }
   0x2   :  { %852 = vmatprep.subr.bf16.mxu0 %v2043_v0  ;;  %v2048_v4 = vld [vmem:[%s3337_s2 + $0x8] ss:$16 sps:$4 sm:$0xff]   ;;  %1078 = vmatprep.subr.bf16.mxu1 %v2045_v2  ;;  %v2049_v5 = vld [vmem:[%s3337_s2 + $0x24] ss:$16 sps:$4 sm:$0xff]   ;;  %v2051_v6 = vld [vmem:[%s3337_s2 + $0x2c] ss:$16 sps:$4 sm:$0xff]  }
   0x3   :  { %853 = vmatpush1.bf16.msra.mxu0 %v2047_v3  ;;  %1079 = vmatpush1.bf16.msra.mxu1 %v2048_v4  ;;  %v2053_v7 = vld [vmem:[%s3337_s2 + $0x20] ss:$16 sps:$4 sm:$0xff]   ;;  %v2054_v8 = vld [vmem:[%s3337_s2 + $0x28] ss:$16 sps:$4 sm:$0xff]   ;;  %v2055_v9 = vld [vmem:[%s3337_s2 + $0x44] ss:$16 sps:$4 sm:$0xff]  }
   0x4   :  { %854 = vmatprep.subr.bf16.mxu0 %v2049_v5  ;;  %1080 = vmatprep.subr.bf16.mxu1 %v2051_v6  ;;  %v2057_v10 = vld [vmem:[%s3337_s2 + $0x4c] ss:$16 sps:$4 sm:$0xff]   ;;  %v2059_v11 = vld [vmem:[%s3337_s2 + $0x40] ss:$16 sps:$4 sm:$0xff]   ;;  %v2060_v12 = vld [vmem:[%s3337_s2 + $0x48] ss:$16 sps:$4 sm:$0xff]  }
   0x5   :  { %v2061_v13 = vld [vmem:[%s3337_s2 + $0x64] ss:$16 sps:$4 sm:$0xff]   ;;  %v2063_v14 = vld [vmem:[%s3337_s2 + $0x6c] ss:$16 sps:$4 sm:$0xff]   ;;  %v2065_v15 = vld [vmem:[%s3337_s2 + $0x60] ss:$16 sps:$4 sm:$0xff]  }
   0x6   :  { %v2066_v16 = vld [vmem:[%s3337_s2 + $0x68] ss:$16 sps:$4 sm:$0xff]   ;;  %v2067_v17 = vld [vmem:[%s3337_s2 + $0x84] ss:$16 sps:$4 sm:$0xff]   ;;  %v2069_v18 = vld [vmem:[%s3337_s2 + $0x8c] ss:$16 sps:$4 sm:$0xff]  }
   0x7   :  { %855 = vmatpush1.bf16.msra.mxu0 %v2053_v7  ;;  %1081 = vmatpush1.bf16.msra.mxu1 %v2054_v8  ;;  %v2071_v19 = vld [vmem:[%s3337_s2 + $0x80] ss:$16 sps:$4 sm:$0xff]   ;;  %v2072_v20 = vld [vmem:[%s3337_s2 + $0x88] ss:$16 sps:$4 sm:$0xff]   ;;  %v2073_v21 = vld [vmem:[%s3337_s2 + $0xa4] ss:$16 sps:$4 sm:$0xff]  }
   0x8   :  { %856 = vmatprep.subr.bf16.mxu0 %v2055_v9  ;;  %1082 = vmatprep.subr.bf16.mxu1 %v2057_v10  ;;  %v2075_v22 = vld [vmem:[%s3337_s2 + $0xac] ss:$16 sps:$4 sm:$0xff]   ;;  %v2077_v23 = vld [vmem:[%s3337_s2 + $0xa0] ss:$16 sps:$4 sm:$0xff]   ;;  %v2078_v24 = vld [vmem:[%s3337_s2 + $0xa8] ss:$16 sps:$4 sm:$0xff]  }
   0x9   :  { %v2079_v25 = vld [vmem:[%s3337_s2 + $0xc4] ss:$16 sps:$4 sm:$0xff]   ;;  %v2081_v26 = vld [vmem:[%s3337_s2 + $0xcc] ss:$16 sps:$4 sm:$0xff]   ;;  %v2083_v27 = vld [vmem:[%s3337_s2 + $0xc0] ss:$16 sps:$4 sm:$0xff]  }
   0xa   :  { %v2084_v28 = vld [vmem:[%s3337_s2 + $0xc8] ss:$16 sps:$4 sm:$0xff]   ;;  %v2085_v29 = vld [vmem:[%s3337_s2 + $0xe4] ss:$16 sps:$4 sm:$0xff]   ;;  %v2087_v30 = vld [vmem:[%s3337_s2 + $0xec] ss:$16 sps:$4 sm:$0xff]  }
   0xb   :  { %857 = vmatpush1.bf16.msra.mxu0 %v2059_v11  ;;  %1083 = vmatpush1.bf16.msra.mxu1 %v2060_v12  ;;  %v2089_v31 = vld [vmem:[%s3337_s2 + $0xe0] ss:$16 sps:$4 sm:$0xff]   ;;  %v2090_v32 = vld [vmem:[%s3337_s2 + $0xe8] ss:$16 sps:$4 sm:$0xff]   ;;  %v2091_v33 = vld [vmem:[%s3337_s2 + $0x104] ss:$16 sps:$4 sm:$0xff]  }
   0xc   :  { %858 = vmatprep.subr.bf16.mxu0 %v2061_v13  ;;  %1084 = vmatprep.subr.bf16.mxu1 %v2063_v14  ;;  %v2093_v34 = vld [vmem:[%s3337_s2 + $0x10c] ss:$16 sps:$4 sm:$0xff]   ;;  %v2095_v35 = vld [vmem:[%s3337_s2 + $0x100] ss:$16 sps:$4 sm:$0xff]   ;;  %v2096_v36 = vld [vmem:[%s3337_s2 + $0x108] ss:$16 sps:$4 sm:$0xff]  }
   0xd   :  { %v2097_v37 = vld [vmem:[%s3337_s2 + $0x124] ss:$16 sps:$4 sm:$0xff]   ;;  %v2099_v38 = vld [vmem:[%s3337_s2 + $0x12c] ss:$16 sps:$4 sm:$0xff]   ;;  %v2101_v39 = vld [vmem:[%s3337_s2 + $0x120] ss:$16 sps:$4 sm:$0xff]  }
   0xe   :  { %v2102_v40 = vld [vmem:[%s3337_s2 + $0x128] ss:$16 sps:$4 sm:$0xff]   ;;  %v2103_v41 = vld [vmem:[%s3337_s2 + $0x144] ss:$16 sps:$4 sm:$0xff]   ;;  %v2105_v42 = vld [vmem:[%s3337_s2 + $0x14c] ss:$16 sps:$4 sm:$0xff]  }
   0xf   :  { %859 = vmatpush1.bf16.msra.mxu0 %v2065_v15  ;;  %1085 = vmatpush1.bf16.msra.mxu1 %v2066_v16  ;;  %v2107_v43 = vld [vmem:[%s3337_s2 + $0x140] ss:$16 sps:$4 sm:$0xff]   ;;  %v2108_v44 = vld [vmem:[%s3337_s2 + $0x148] ss:$16 sps:$4 sm:$0xff]   ;;  %v2109_v45 = vld [vmem:[%s3337_s2 + $0x164] ss:$16 sps:$4 sm:$0xff]  }
  0x10   :  { %860 = vmatprep.subr.bf16.mxu0 %v2067_v17  ;;  %1086 = vmatprep.subr.bf16.mxu1 %v2069_v18  ;;  %v2111_v46 = vld [vmem:[%s3337_s2 + $0x16c] ss:$16 sps:$4 sm:$0xff]   ;;  %v2113_v47 = vld [vmem:[%s3337_s2 + $0x160] ss:$16 sps:$4 sm:$0xff]   ;;  %v2114_v48 = vld [vmem:[%s3337_s2 + $0x168] ss:$16 sps:$4 sm:$0xff]  }
  0x11   :  { %v2141_v49 = vld [vmem:[%s3338_s0 + $0x4] ss:$12 sps:$4 sm:$0xff]   ;;  %v2117_v51 = vld [vmem:[%s3337_s2 + $0x18c] ss:$16 sps:$4 sm:$0xff]   ;;  %v2120_v53 = vld [vmem:[%s3337_s2 + $0x188] ss:$16 sps:$4 sm:$0xff]  }
  0x12   :  { %v2115_v50 = vld [vmem:[%s3337_s2 + $0x184] ss:$16 sps:$4 sm:$0xff]   ;;  %884 = vmatprep.mubr.bf16.mxu0 %v2141_v49  ;;  %1110 = vmatprep.mubr.bf16.mxu1 %v2141_v49  ;;  %v2119_v52 = vld [vmem:[%s3337_s2 + $0x180] ss:$16 sps:$4 sm:$0xff]   ;;  %v2123_v55 = vld [vmem:[%s3337_s2 + $0x1ac] ss:$16 sps:$4 sm:$0xff]  }
  0x13   :  { %861 = vmatpush1.bf16.msra.mxu0 %v2071_v19  ;;  %1087 = vmatpush1.bf16.msra.mxu1 %v2072_v20  ;;  %v2121_v54 = vld [vmem:[%s3337_s2 + $0x1a4] ss:$16 sps:$4 sm:$0xff]   ;;  %v2125_v56 = vld [vmem:[%s3337_s2 + $0x1a0] ss:$16 sps:$4 sm:$0xff]   ;;  %v2126_v57 = vld [vmem:[%s3337_s2 + $0x1a8] ss:$16 sps:$4 sm:$0xff]  }
  0x14   :  { %862 = vmatprep.subr.bf16.mxu0 %v2073_v21  ;;  %1088 = vmatprep.subr.bf16.mxu1 %v2075_v22  ;;  %v2127_v58 = vld [vmem:[%s3337_s2 + $0x1c4] ss:$16 sps:$4 sm:$0xff]   ;;  %v2129_v59 = vld [vmem:[%s3337_s2 + $0x1cc] ss:$16 sps:$4 sm:$0xff]   ;;  %v2131_v60 = vld [vmem:[%s3337_s2 + $0x1c0] ss:$16 sps:$4 sm:$0xff]  }
  0x15   :  { %v2132_v61 = vld [vmem:[%s3337_s2 + $0x1c8] ss:$16 sps:$4 sm:$0xff]   ;;  %v2133_v62 = vld [vmem:[%s3337_s2 + $0x1e4] ss:$16 sps:$4 sm:$0xff]   ;;  %v2135_v63 = vld [vmem:[%s3337_s2 + $0x1ec] ss:$16 sps:$4 sm:$0xff]  }
  0x16   :  { %v2137_v0 = vld [vmem:[%s3337_s2 + $0x1e0] ss:$16 sps:$4 sm:$0xff]   ;;  %v2138_v2 = vld [vmem:[%s3337_s2 + $0x1e8] ss:$16 sps:$4 sm:$0xff]   ;;  %v2144_v3 = vld [vmem:[%s3337_s2 + $0x204] ss:$16 sps:$4 sm:$0xff]  }
  0x17   :  { %863 = vmatpush1.bf16.msra.mxu0 %v2077_v23  ;;  %1089 = vmatpush1.bf16.msra.mxu1 %v2078_v24  ;;  %v2147_v4 = vld [vmem:[%s3337_s2 + $0x20c] ss:$16 sps:$4 sm:$0xff]   ;;  %v2142_v6 = vld [vmem:[%s3337_s2 + $0x200] ss:$16 sps:$4 sm:$0xff]   ;;  %v2145_v7 = vld [vmem:[%s3337_s2 + $0x208] ss:$16 sps:$4 sm:$0xff]  }
  0x18   :  { %864 = vmatprep.subr.bf16.mxu0 %v2079_v25  ;;  %1090 = vmatprep.subr.bf16.mxu1 %v2081_v26  ;;  %v2139_v5 = vld [vmem:[%s3338_s0] ss:$12 sps:$4 sm:$0xff]   ;;  %v2148_v8 = vld [vmem:[%s3338_s0 + $0x1c] ss:$12 sps:$4 sm:$0xff]   ;;  %v2153_v9 = vld [vmem:[%s3337_s2 + $0x224] ss:$16 sps:$4 sm:$0xff]  }
  0x19   :  { %v2156_v10 = vld [vmem:[%s3337_s2 + $0x22c] ss:$16 sps:$4 sm:$0xff]   ;;  %v2151_v11 = vld [vmem:[%s3337_s2 + $0x220] ss:$16 sps:$4 sm:$0xff]   ;;  %v2154_v12 = vld [vmem:[%s3337_s2 + $0x228] ss:$16 sps:$4 sm:$0xff]  }
  0x1a   :  { %v2162_v13 = vld [vmem:[%s3337_s2 + $0x244] ss:$16 sps:$4 sm:$0xff]   ;;  %v2165_v14 = vld [vmem:[%s3337_s2 + $0x24c] ss:$16 sps:$4 sm:$0xff]   ;;  %v2160_v17 = vld [vmem:[%s3337_s2 + $0x240] ss:$16 sps:$4 sm:$0xff]  }
  0x1b   :  { %865 = vmatpush1.bf16.msra.mxu0 %v2083_v27  ;;  %1091 = vmatpush1.bf16.msra.mxu1 %v2084_v28  ;;  %v2150_v15 = vld [vmem:[%s3338_s0 + $0x18] ss:$12 sps:$4 sm:$0xff]   ;;  %v2157_v16 = vld [vmem:[%s3338_s0 + $0x34] ss:$12 sps:$4 sm:$0xff]   ;;  %v2174_v20 = vld [vmem:[%s3337_s2 + $0x26c] ss:$16 sps:$4 sm:$0xff]  }
  0x1c   :  { %866 = vmatprep.subr.bf16.mxu0 %v2085_v29  ;;  %1092 = vmatprep.subr.bf16.mxu1 %v2087_v30  ;;  %v2163_v18 = vld [vmem:[%s3337_s2 + $0x248] ss:$16 sps:$4 sm:$0xff]   ;;  %v2171_v19 = vld [vmem:[%s3337_s2 + $0x264] ss:$16 sps:$4 sm:$0xff]   ;;  %v2169_v21 = vld [vmem:[%s3337_s2 + $0x260] ss:$16 sps:$4 sm:$0xff]  }
  0x1d   :  { %v2172_v22 = vld [vmem:[%s3337_s2 + $0x268] ss:$16 sps:$4 sm:$0xff]   ;;  %v2159_v23 = vld [vmem:[%s3338_s0 + $0x30] ss:$12 sps:$4 sm:$0xff]   ;;  %v2180_v24 = vld [vmem:[%s3337_s2 + $0x284] ss:$16 sps:$4 sm:$0xff]  }
  0x1e   :  { %v2183_v25 = vld [vmem:[%s3337_s2 + $0x28c] ss:$16 sps:$4 sm:$0xff]   ;;  %v2178_v27 = vld [vmem:[%s3337_s2 + $0x280] ss:$16 sps:$4 sm:$0xff]   ;;  %v2181_v28 = vld [vmem:[%s3337_s2 + $0x288] ss:$16 sps:$4 sm:$0xff]  }
  0x1f   :  { %867 = vmatpush1.bf16.msra.mxu0 %v2089_v31  ;;  %1093 = vmatpush1.bf16.msra.mxu1 %v2090_v32  ;;  %v2166_v26 = vld [vmem:[%s3338_s0 + $0x4c] ss:$12 sps:$4 sm:$0xff]   ;;  %v2189_v29 = vld [vmem:[%s3337_s2 + $0x2a4] ss:$16 sps:$4 sm:$0xff]  }
  0x20   :  { %868 = vmatprep.subr.bf16.mxu0 %v2091_v33  ;;  %1094 = vmatprep.subr.bf16.mxu1 %v2093_v34  ;;  %v2192_v30 = vld [vmem:[%s3337_s2 + $0x2ac] ss:$16 sps:$4 sm:$0xff]   ;;  %v148_v31 = vld [vmem:[%s3339_s1] sm:$0xff]  ;;  %v150_v32 = vld [vmem:[%s3339_s1 + $0x10] sm:$0xff] }
  0x21   :  { %v2187_v33 = vld [vmem:[%s3337_s2 + $0x2a0] ss:$16 sps:$4 sm:$0xff]   ;;  %v2190_v34 = vld [vmem:[%s3337_s2 + $0x2a8] ss:$16 sps:$4 sm:$0xff]   ;;  %166 = vperm.xlu0 %2041, %v148_v31   ;;  %176 = vperm.xlu1 %2042, %v150_v32  }
  0x22   :  { %v153_v49 = vld [vmem:[%s3339_s1 + $0x28] sm:$0xff] }
  0x23   :  { %869 = vmatpush1.bf16.msra.mxu0 %v2095_v35  ;;  %1095 = vmatpush1.bf16.msra.mxu1 %v2096_v36  ;;  %v2198_v35 = vld [vmem:[%s3337_s2 + $0x2c4] ss:$16 sps:$4 sm:$0xff]   ;;  %v2201_v36 = vld [vmem:[%s3337_s2 + $0x2cc] ss:$16 sps:$4 sm:$0xff]  }
  0x24   :  { %870 = vmatprep.subr.bf16.mxu0 %v2097_v37  ;;  %1096 = vmatprep.subr.bf16.mxu1 %v2099_v38  ;;  %v2168_v37 = vld [vmem:[%s3338_s0 + $0x48] ss:$12 sps:$4 sm:$0xff]   ;;  %v2175_v38 = vld [vmem:[%s3338_s0 + $0x64] ss:$12 sps:$4 sm:$0xff]  }
  0x27   :  { %871 = vmatpush1.bf16.msra.mxu0 %v2101_v39  ;;  %1097 = vmatpush1.bf16.msra.mxu1 %v2102_v40  ;;  %v2196_v39 = vld [vmem:[%s3337_s2 + $0x2c0] ss:$16 sps:$4 sm:$0xff]   ;;  %v2199_v40 = vld [vmem:[%s3337_s2 + $0x2c8] ss:$16 sps:$4 sm:$0xff]  }
  0x28   :  { %872 = vmatprep.subr.bf16.mxu0 %v2103_v41  ;;  %1098 = vmatprep.subr.bf16.mxu1 %v2105_v42  ;;  %v2207_v41 = vld [vmem:[%s3337_s2 + $0x2e4] ss:$16 sps:$4 sm:$0xff]   ;;  %v2210_v42 = vld [vmem:[%s3337_s2 + $0x2ec] ss:$16 sps:$4 sm:$0xff]  }
  0x2b   :  { %873 = vmatpush1.bf16.msra.mxu0 %v2107_v43  ;;  %1099 = vmatpush1.bf16.msra.mxu1 %v2108_v44  ;;  %v149_v43 = vld [vmem:[%s3339_s1 + $0x8] sm:$0xff]  ;;  %v151_v44 = vld [vmem:[%s3339_s1 + $0x18] sm:$0xff] }
  0x2c   :  { %874 = vmatprep.subr.bf16.mxu0 %v2109_v45  ;;  %1100 = vmatprep.subr.bf16.mxu1 %v2111_v46  ;;  %v2205_v45 = vld [vmem:[%s3337_s2 + $0x2e0] ss:$16 sps:$4 sm:$0xff]   ;;  %v2208_v46 = vld [vmem:[%s3337_s2 + $0x2e8] ss:$16 sps:$4 sm:$0xff]  }
  0x2d   :  { %171 = vperm.xlu0 %2041, %v149_v43   ;;  %181 = vperm.xlu1 %2042, %v151_v44  }
  0x2f   :  { %875 = vmatpush1.bf16.msra.mxu0 %v2113_v47  ;;  %1101 = vmatpush1.bf16.msra.mxu1 %v2114_v48  ;;  %v2177_v47 = vld [vmem:[%s3338_s0 + $0x60] ss:$12 sps:$4 sm:$0xff]   ;;  %v2184_v48 = vld [vmem:[%s3338_s0 + $0x7c] ss:$12 sps:$4 sm:$0xff]  }
  0x30   :  { %876 = vmatprep.subr.bf16.mxu0 %v2115_v50  ;;  %1102 = vmatprep.subr.bf16.mxu1 %v2117_v51  ;;  %v152_v50 = vld [vmem:[%s3339_s1 + $0x20] sm:$0xff]  ;;  %v155_v51 = vld [vmem:[%s3339_s1 + $0x38] sm:$0xff] }
  0x31   :  { %191 = vperm.xlu1 %2042, %v153_v49   ;;  %186 = vperm.xlu0 %2041, %v152_v50  }
  0x33   :  { %877 = vmatpush1.bf16.msra.mxu0 %v2119_v52  ;;  %1103 = vmatpush1.bf16.msra.mxu1 %v2120_v53  ;;  %v154_v52 = vld [vmem:[%s3339_s1 + $0x30] sm:$0xff]  ;;  %v2186_v53 = vld [vmem:[%s3338_s0 + $0x78] ss:$12 sps:$4 sm:$0xff]  }
  0x34   :  { %878 = vmatprep.subr.bf16.mxu0 %v2121_v54  ;;  %1104 = vmatprep.subr.bf16.mxu1 %v2123_v55  ;;  %v2193_v54 = vld [vmem:[%s3338_s0 + $0x94] ss:$12 sps:$4 sm:$0xff]   ;;  %v157_v55 = vld [vmem:[%s3339_s1 + $0x48] sm:$0xff] }
  0x35   :  { %201 = vperm.xlu1 %2042, %v155_v51   ;;  %196 = vperm.xlu0 %2041, %v154_v52  }
  0x37   :  { %879 = vmatpush1.bf16.msra.mxu0 %v2125_v56  ;;  %1105 = vmatpush1.bf16.msra.mxu1 %v2126_v57  ;;  %v156_v56 = vld [vmem:[%s3339_s1 + $0x40] sm:$0xff]  ;;  %v159_v57 = vld [vmem:[%s3339_s1 + $0x58] sm:$0xff] }
  0x38   :  { %880 = vmatprep.subr.bf16.mxu0 %v2127_v58  ;;  %1106 = vmatprep.subr.bf16.mxu1 %v2129_v59  ;;  %v158_v58 = vld [vmem:[%s3339_s1 + $0x50] sm:$0xff] }
  0x39   :  { %211 = vperm.xlu1 %2042, %v157_v55   ;;  %206 = vperm.xlu0 %2041, %v156_v56   ;;  %v2195_v59 = vld [vmem:[%s3338_s0 + $0x90] ss:$12 sps:$4 sm:$0xff]  }
  0x3b   :  { %881 = vmatpush1.bf16.msra.mxu0 %v2131_v60  ;;  %1107 = vmatpush1.bf16.msra.mxu1 %v2132_v61  ;;  %v2202_v60 = vld [vmem:[%s3338_s0 + $0xac] ss:$12 sps:$4 sm:$0xff]  }
  0x3c   :  { %882 = vmatprep.subr.bf16.mxu0 %v2133_v62  ;;  %1108 = vmatprep.subr.bf16.mxu1 %v2135_v63  ;;  %v161_v61 = vld [vmem:[%s3339_s1 + $0x68] sm:$0xff]  ;;  %v160_v62 = vld [vmem:[%s3339_s1 + $0x60] sm:$0xff]  ;;  %v163_v63 = vld [vmem:[%s3339_s1 + $0x78] sm:$0xff] }
  0x3d   :  { %221 = vperm.xlu1 %2042, %v159_v57   ;;  %216 = vperm.xlu0 %2041, %v158_v58  }
  0x3f   :  { %883 = vmatpush1.bf16.msra.mxu0 %v2137_v0  ;;  %1109 = vmatpush1.bf16.msra.mxu1 %v2138_v2  ;;  %v162_v0 = vld [vmem:[%s3339_s1 + $0x70] sm:$0xff] }
  0x40   :  { %965 = vmatprep.subr.bf16.mxu0 %v2144_v3  ;;  %1191 = vmatprep.subr.bf16.mxu1 %v2147_v4  ;;  %v2204_v2 = vld [vmem:[%s3338_s0 + $0xa8] ss:$12 sps:$4 sm:$0xff]   ;;  %v2212_v4 = vld [vmem:[%s3338_s0 + $0x20] ss:$12 sps:$4 sm:$0xff]  }
  0x41   :  { %231 = vperm.xlu1 %2042, %v161_v61   ;;  %226 = vperm.xlu0 %2041, %v160_v62   ;;  %v2211_v3 = vld [vmem:[%s3338_s0 + $0x8] ss:$12 sps:$4 sm:$0xff]  }
  0x42   :  { %885 = vmatmul.mubr.bf16.vlgmr.msra.gmra.mrb[0].mxu0 %v2139_v5  ;;  %1111 = vmatmul.mubr.bf16.vlgmr.msra.gmra.mrb[0].mxu1 %v2139_v5  ;;  %v2213_v5 = vld [vmem:[%s3338_s0 + $0x38] ss:$12 sps:$4 sm:$0xff]  }
  0x43   :  { %966 = vmatpush1.bf16.msra.mxu0 %v2142_v6  ;;  %1192 = vmatpush1.bf16.msra.mxu1 %v2145_v7  ;;  %v2214_v6 = vld [vmem:[%s3338_s0 + $0x50] ss:$12 sps:$4 sm:$0xff]   ;;  %v2215_v7 = vld [vmem:[%s3338_s0 + $0x68] ss:$12 sps:$4 sm:$0xff]  }
  0x44   :  { %894 = vmatprep.mubr.bf16.mxu0 %v2148_v8  ;;  %1120 = vmatprep.mubr.bf16.mxu1 %v2148_v8  ;;  %v2216_v8 = vld [vmem:[%s3338_s0 + $0x80] ss:$12 sps:$4 sm:$0xff]  }
  0x45   :  { %967 = vmatprep.subr.bf16.mxu0 %v2153_v9  ;;  %1193 = vmatprep.subr.bf16.mxu1 %v2156_v10  ;;  %v2217_v9 = vld [vmem:[%s3338_s0 + $0x98] ss:$12 sps:$4 sm:$0xff]   ;;  %v2218_v10 = vld [vmem:[%s3338_s0 + $0xb0] ss:$12 sps:$4 sm:$0xff]  }
  0x46   :  { %241 = vperm.xlu1 %2042, %v163_v63   ;;  %236 = vperm.xlu0 %2041, %v162_v0  }
  0x47   :  { %968 = vmatpush1.bf16.msra.mxu0 %v2151_v11  ;;  %1194 = vmatpush1.bf16.msra.mxu1 %v2154_v12 }
  0x48   :  { %969 = vmatprep.subr.bf16.mxu0 %v2162_v13  ;;  %1195 = vmatprep.subr.bf16.mxu1 %v2165_v14 }
  0x4a   :  { %895 = vmatmul.mubr.bf16.gmra.mrb[4].mxu0 %v2150_v15  ;;  %1121 = vmatmul.mubr.bf16.gmra.mrb[4].mxu1 %v2150_v15 }
  0x4b   :  { %904 = vmatprep.mubr.bf16.mxu0 %v2157_v16  ;;  %1130 = vmatprep.mubr.bf16.mxu1 %v2157_v16 }
  0x4c   :  { %970 = vmatpush1.bf16.msra.mxu0 %v2160_v17  ;;  %1196 = vmatpush1.bf16.msra.mxu1 %v2163_v18 }
  0x4d   :  { %971 = vmatprep.subr.bf16.mxu0 %v2171_v19  ;;  %1197 = vmatprep.subr.bf16.mxu1 %v2174_v20 }
  0x50   :  { %972 = vmatpush1.bf16.msra.mxu0 %v2169_v21  ;;  %1198 = vmatpush1.bf16.msra.mxu1 %v2172_v22 }
  0x51   :  { %973 = vmatprep.subr.bf16.mxu0 %v2180_v24  ;;  %1199 = vmatprep.subr.bf16.mxu1 %v2183_v25 }
  0x52   :  { %905 = vmatmul.mubr.bf16.gmra.mrb[8].mxu0 %v2159_v23  ;;  %1131 = vmatmul.mubr.bf16.gmra.mrb[8].mxu1 %v2159_v23 }
  0x53   :  { %914 = vmatprep.mubr.bf16.mxu0 %v2166_v26  ;;  %1140 = vmatprep.mubr.bf16.mxu1 %v2166_v26 }
  0x54   :  { %974 = vmatpush1.bf16.msra.mxu0 %v2178_v27  ;;  %1200 = vmatpush1.bf16.msra.mxu1 %v2181_v28 }
  0x55   :  { %975 = vmatprep.subr.bf16.mxu0 %v2189_v29  ;;  %1201 = vmatprep.subr.bf16.mxu1 %v2192_v30 }
  0x58   :  { %976 = vmatpush1.bf16.msra.mxu0 %v2187_v33  ;;  %1202 = vmatpush1.bf16.msra.mxu1 %v2190_v34 }
  0x59   :  { %977 = vmatprep.subr.bf16.mxu0 %v2198_v35  ;;  %1203 = vmatprep.subr.bf16.mxu1 %v2201_v36 }
  0x5a   :  { %915 = vmatmul.mubr.bf16.gmra.mrb[12].mxu0 %v2168_v37  ;;  %1141 = vmatmul.mubr.bf16.gmra.mrb[12].mxu1 %v2168_v37 }
  0x5b   :  { %924 = vmatprep.mubr.bf16.mxu0 %v2175_v38  ;;  %1150 = vmatprep.mubr.bf16.mxu1 %v2175_v38 }
  0x5c   :  { %978 = vmatpush1.bf16.msra.mxu0 %v2196_v39  ;;  %1204 = vmatpush1.bf16.msra.mxu1 %v2199_v40 }
  0x5d   :  { %979 = vmatprep.subr.bf16.mxu0 %v2207_v41  ;;  %1205 = vmatprep.subr.bf16.mxu1 %v2210_v42 }
  0x60   :  { %980 = vmatpush1.bf16.msra.mxu0 %v2205_v45  ;;  %1206 = vmatpush1.bf16.msra.mxu1 %v2208_v46 }
  0x62   :  { %925 = vmatmul.mubr.bf16.gmra.mrb[16].mxu0 %v2177_v47  ;;  %1151 = vmatmul.mubr.bf16.gmra.mrb[16].mxu1 %v2177_v47 }
  0x63   :  { %934 = vmatprep.mubr.bf16.mxu0 %v2184_v48  ;;  %1160 = vmatprep.mubr.bf16.mxu1 %v2184_v48 }
  0x6a   :  { %935 = vmatmul.mubr.bf16.gmra.mrb[20].mxu0 %v2186_v53  ;;  %1161 = vmatmul.mubr.bf16.gmra.mrb[20].mxu1 %v2186_v53 }
  0x6b   :  { %944 = vmatprep.mubr.bf16.mxu0 %v2193_v54  ;;  %1170 = vmatprep.mubr.bf16.mxu1 %v2193_v54 }
  0x72   :  { %945 = vmatmul.mubr.bf16.gmra.mrb[24].mxu0 %v2195_v59  ;;  %1171 = vmatmul.mubr.bf16.gmra.mrb[24].mxu1 %v2195_v59 }
  0x73   :  { %954 = vmatprep.mubr.bf16.mxu0 %v2202_v60  ;;  %1180 = vmatprep.mubr.bf16.mxu1 %v2202_v60 }
  0x7a   :  { %955 = vmatmul.mubr.bf16.gmra.mrb[28].mxu0 %v2204_v2  ;;  %1181 = vmatmul.mubr.bf16.gmra.mrb[28].mxu1 %v2204_v2 }
  0x7b   :  { %997 = vmatprep.mubr.bf16.mxu0 %v2475_v1  ;;  %1223 = vmatprep.mubr.bf16.mxu1 %v2475_v1 }
  0x82   :  { %998 = vmatmul.mubr.bf16.vlgmr.msra.gmra.mrb[0].mxu0 %v2211_v3  ;;  %1224 = vmatmul.mubr.bf16.vlgmr.msra.gmra.mrb[0].mxu1 %v2211_v3 }
  0x83   :  { %1007 = vmatprep.mubr.bf16.mxu0 %v2475_v1  ;;  %1233 = vmatprep.mubr.bf16.mxu1 %v2475_v1 }
  0x8a   :  { %1008 = vmatmul.mubr.bf16.gmra.mrb[4].mxu0 %v2212_v4  ;;  %1234 = vmatmul.mubr.bf16.gmra.mrb[4].mxu1 %v2212_v4 }
  0x8b   :  { %1017 = vmatprep.mubr.bf16.mxu0 %v2475_v1  ;;  %1243 = vmatprep.mubr.bf16.mxu1 %v2475_v1 }
  0x92   :  { %1018 = vmatmul.mubr.bf16.gmra.mrb[8].mxu0 %v2213_v5  ;;  %1244 = vmatmul.mubr.bf16.gmra.mrb[8].mxu1 %v2213_v5 }
  0x93   :  { %1027 = vmatprep.mubr.bf16.mxu0 %v2475_v1  ;;  %1253 = vmatprep.mubr.bf16.mxu1 %v2475_v1 }
  0x9a   :  { %1028 = vmatmul.mubr.bf16.gmra.mrb[12].mxu0 %v2214_v6  ;;  %1254 = vmatmul.mubr.bf16.gmra.mrb[12].mxu1 %v2214_v6 }
  0x9b   :  { %1037 = vmatprep.mubr.bf16.mxu0 %v2475_v1  ;;  %1263 = vmatprep.mubr.bf16.mxu1 %v2475_v1 }
  0xa0   :  { %v167_v11 = vpop.permute.xlu0 %166  ;;  %v177_v34 = vpop.permute.xlu1 %176 }
  0xa2   :  { %1038 = vmatmul.mubr.bf16.gmra.mrb[16].mxu0 %v2215_v7  ;;  %1264 = vmatmul.mubr.bf16.gmra.mrb[16].mxu1 %v2215_v7 }
  0xa3   :  { %1047 = vmatprep.mubr.bf16.mxu0 %v2475_v1  ;;  %1273 = vmatprep.mubr.bf16.mxu1 %v2475_v1 }
  0xaa   :  { %1048 = vmatmul.mubr.bf16.gmra.mrb[20].mxu0 %v2216_v8  ;;  %1274 = vmatmul.mubr.bf16.gmra.mrb[20].mxu1 %v2216_v8 }
  0xab   :  { %1057 = vmatprep.mubr.bf16.mxu0 %v2475_v1  ;;  %1283 = vmatprep.mubr.bf16.mxu1 %v2475_v1 }
  0xac   :  { %v172_v12 = vpop.permute.xlu0 %171  ;;  %v182_v49 = vpop.permute.xlu1 %181 }
  0xb2   :  { %1058 = vmatmul.mubr.bf16.gmra.mrb[24].mxu0 %v2217_v9  ;;  %1284 = vmatmul.mubr.bf16.gmra.mrb[24].mxu1 %v2217_v9 }
  0xb3   :  { %1067 = vmatprep.mubr.bf16.mxu0 %v2475_v1  ;;  %1293 = vmatprep.mubr.bf16.mxu1 %v2475_v1 }
  0xba   :  { %1068 = vmatmul.mubr.bf16.gmra.mrb[28].mxu0 %v2218_v10  ;;  %1294 = vmatmul.mubr.bf16.gmra.mrb[28].mxu1 %v2218_v10 }
 0x155   :  { %v999_v13 = vpop.f32.mrb[0].mxu0  ;;  %v1225_v14 = vpop.f32.mrb[0].mxu1 }
 0x156   :  { %v1912_v15 = vadd.f32 %v999_v13, %v167_v11  ;;  %v1944_v16 = vadd.f32 %v1225_v14, %v167_v11  ;;  %v1001_v17 = vpop.f32.mrb[1].mxu0  ;;  %v1227_v18 = vpop.f32.mrb[1].mxu1 }
 0x157   :  { %v1913_v19 = vadd.f32 %v1001_v17, %v167_v11  ;;  %v1945_v20 = vadd.f32 %v1227_v18, %v167_v11  ;;  %v1003_v21 = vpop.f32.mrb[2].mxu0  ;;  %v1229_v22 = vpop.f32.mrb[2].mxu1 }
 0x158   :  { %v1864_v23 = vmul.f32 -1.442695, %v1912_v15  ;;  %v1866_v1 = vmul.f32 -1.442695, %v1944_v16  ;;  %v1914_v24 = vadd.f32 %v1003_v21, %v172_v12  ;;  %v1946_v25 = vadd.f32 %v1229_v22, %v172_v12  ;;  %v1005_v26 = vpop.f32.mrb[3].mxu0  ;;  %v1231_v27 = vpop.f32.mrb[3].mxu1 }
 0x159   :  { %v1865_v28 = vmul.f32 -1.442695, %v1913_v19  ;;  %v1867_v29 = vmul.f32 -1.442695, %v1945_v20  ;;  %v1915_v30 = vadd.f32 %v1005_v26, %v172_v12  ;;  %v1947_v31 = vadd.f32 %v1231_v27, %v172_v12  ;;  %v187_v19 = vpop.permute.xlu0 %186 }
 0x15a   :  { %2219 = vpow2.f32 %v1864_v23  ;;  %v1868_v32 = vmul.f32 -1.442695, %v1914_v24  ;;  %v1870_v33 = vmul.f32 -1.442695, %v1946_v25 }
 0x15b   :  { %2221 = vpow2.f32 %v1866_v1  ;;  %v1869_v35 = vmul.f32 -1.442695, %v1915_v30  ;;  %v1871_v36 = vmul.f32 -1.442695, %v1947_v31 }
 0x15c   :  { %2223 = vpow2.f32 %v1865_v28 }
 0x15d   :  { %2225 = vpow2.f32 %v1867_v29  ;;  %v1009_v37 = vpop.f32.mrb[4].mxu0  ;;  %v1235_v38 = vpop.f32.mrb[4].mxu1 }
 0x15e   :  { %2227 = vpow2.f32 %v1868_v32  ;;  %v1916_v39 = vadd.f32 %v1009_v37, %v177_v34  ;;  %v1011_v40 = vpop.f32.mrb[5].mxu0  ;;  %v1237_v41 = vpop.f32.mrb[5].mxu1  ;;  %v1948_v42 = vadd.f32 %v1235_v38, %v177_v34 }
 0x15f   :  { %2229 = vpow2.f32 %v1870_v33  ;;  %v1013_v43 = vpop.f32.mrb[6].mxu0  ;;  %v1239_v44 = vpop.f32.mrb[6].mxu1  ;;  %v1917_v46 = vadd.f32 %v1011_v40, %v177_v34  ;;  %v1949_v50 = vadd.f32 %v1237_v41, %v177_v34 }
 0x160   :  { %2231 = vpow2.f32 %v1869_v35  ;;  %v1872_v45 = vmul.f32 -1.442695, %v1916_v39  ;;  %v1015_v47 = vpop.f32.mrb[7].mxu0  ;;  %v1241_v48 = vpop.f32.mrb[7].mxu1  ;;  %v1918_v51 = vadd.f32 %v1013_v43, %v182_v49  ;;  %v1874_v52 = vmul.f32 -1.442695, %v1948_v42 }
 0x161   :  { %2233 = vpow2.f32 %v1871_v36  ;;  %v1873_v54 = vmul.f32 -1.442695, %v1917_v46  ;;  %v1875_v56 = vmul.f32 -1.442695, %v1949_v50  ;;  %v1950_v16 = vadd.f32 %v1239_v44, %v182_v49  ;;  %v192_v38 = vpop.permute.xlu1 %191 }
 0x162   :  { %2235 = vpow2.f32 %v1872_v45  ;;  %v1876_v60 = vmul.f32 -1.442695, %v1918_v51  ;;  %v1919_v18 = vadd.f32 %v1015_v47, %v182_v49  ;;  %v1951_v22 = vadd.f32 %v1241_v48, %v182_v49 }
 0x163   :  { %2237 = vpow2.f32 %v1874_v52  ;;  %v1878_v28 = vmul.f32 -1.442695, %v1950_v16 }
 0x164   :  { %v2220_v53 = vpop.eup %2219  ;;  %2239 = vpow2.f32 %v1873_v54  ;;  %v1877_v33 = vmul.f32 -1.442695, %v1919_v18  ;;  %v1879_v37 = vmul.f32 -1.442695, %v1951_v22 }
 0x165   :  { %v2222_v55 = vpop.eup %2221  ;;  %v1019_v57 = vpop.f32.mrb[8].mxu0  ;;  %v1352_v0 = vadd.f32 1.0, %v2220_v53  ;;  %2241 = vpow2.f32 %v1875_v56 }
 0x166   :  { %v1245_v58 = vpop.f32.mrb[8].mxu1  ;;  %v2224_v59 = vpop.eup %2223  ;;  %v1354_v5 = vadd.f32 1.0, %v2222_v55  ;;  %2243 = vpow2.f32 %v1876_v60  ;;  %v1920_v25 = vadd.f32 %v1019_v57, %v187_v19 }
 0x167   :  { %v1021_v61 = vpop.f32.mrb[9].mxu0  ;;  %v1247_v62 = vpop.f32.mrb[9].mxu1  ;;  %v1353_v8 = vadd.f32 1.0, %v2224_v59  ;;  %2245 = vrcp.f32 %v1352_v0  ;;  %v1952_v29 = vadd.f32 %v1245_v58, %v187_v19 }
 0x168   :  { %v2226_v63 = vpop.eup %2225  ;;  %v1023_v2 = vpop.f32.mrb[10].mxu0  ;;  %2247 = vrcp.f32 %v1354_v5  ;;  %v1921_v34 = vadd.f32 %v1021_v61, %v187_v19  ;;  %v1953_v39 = vadd.f32 %v1247_v62, %v187_v19  ;;  %v1880_v41 = vmul.f32 -1.442695, %v1920_v25 }
 0x169   :  { %v1249_v3 = vpop.f32.mrb[10].mxu1  ;;  %v2228_v4 = vpop.eup %2227  ;;  %v1355_v11 = vadd.f32 1.0, %v2226_v63  ;;  %2249 = vrcp.f32 %v1353_v8  ;;  %v1922_v42 = vadd.f32 %v1023_v2, %v192_v38  ;;  %v1882_v44 = vmul.f32 -1.442695, %v1952_v29 }
 0x16a   :  { %v2932_v6 = vpop.f32.mrb[11].mxu0  ;;  %v2230_v7 = vpop.eup %2229  ;;  %v1356_v13 = vadd.f32 1.0, %v2228_v4  ;;  %v1954_v45 = vadd.f32 %v1249_v3, %v192_v38  ;;  %v1881_v47 = vmul.f32 -1.442695, %v1921_v34  ;;  %v1883_v51 = vmul.f32 -1.442695, %v1953_v39 }
 0x16b   :  { %v2934_v9 = vpop.f32.mrb[11].mxu1  ;;  %v2232_v10 = vpop.eup %2231  ;;  %v1358_v15 = vadd.f32 1.0, %v2230_v7  ;;  %2251 = vrcp.f32 %v1355_v11  ;;  %v1884_v55 = vmul.f32 -1.442695, %v1922_v42  ;;  %v1923_v0 = vadd.f32 %v2932_v6, %v192_v38 }
 0x16c   :  { %v2234_v12 = vpop.eup %2233  ;;  %v1357_v17 = vadd.f32 1.0, %v2232_v10  ;;  %2253 = vrcp.f32 %v1356_v13  ;;  %v1886_v59 = vmul.f32 -1.442695, %v1954_v45  ;;  %v197_v4 = vpop.permute.xlu0 %196  ;;  %v1955_v5 = vadd.f32 %v2934_v9, %v192_v38 }
 0x16d   :  { %v2236_v14 = vpop.eup %2235  ;;  %v2936_v20 = vpop.f32.mrb[12].mxu0  ;;  %v1359_v21 = vadd.f32 1.0, %v2234_v12  ;;  %2255 = vrcp.f32 %v1358_v15 }
 0x16e   :  { %v2938_v23 = vpop.f32.mrb[12].mxu1  ;;  %v2940_v1 = vpop.f32.mrb[13].mxu0  ;;  %v1360_v24 = vadd.f32 1.0, %v2236_v14  ;;  %2257 = vrcp.f32 %v1357_v17  ;;  %v1924_v10 = vadd.f32 %v2936_v20, %v197_v4  ;;  %v1885_v14 = vmul.f32 -1.442695, %v1923_v0 }
 0x16f   :  { %v2942_v26 = vpop.f32.mrb[13].mxu1  ;;  %v2944_v27 = vpop.f32.mrb[14].mxu0  ;;  %2259 = vrcp.f32 %v1359_v21  ;;  %v1956_v13 = vadd.f32 %v2938_v23, %v197_v4  ;;  %v1887_v17 = vmul.f32 -1.442695, %v1955_v5 }
 0x170   :  { %v2946_v30 = vpop.f32.mrb[14].mxu1  ;;  %v2948_v31 = vpop.f32.mrb[15].mxu0  ;;  %2261 = vrcp.f32 %v1360_v24  ;;  %v1888_v21 = vmul.f32 -1.442695, %v1924_v10 }
 0x171   :  { %v2238_v32 = vpop.eup %2237  ;;  %v2950_v35 = vpop.f32.mrb[15].mxu1  ;;  %2263 = vpow2.f32 %v1878_v28  ;;  %v1890_v25 = vmul.f32 -1.442695, %v1956_v13 }
 0x172   :  { %v2240_v36 = vpop.eup %2239  ;;  %2265 = vpow2.f32 %v1877_v33  ;;  %v1362_v63 = vadd.f32 1.0, %v2238_v32  ;;  %v202_v42 = vpop.permute.xlu1 %201 }
 0x173   :  { %v2242_v40 = vpop.eup %2241  ;;  %2267 = vpow2.f32 %v1879_v37  ;;  %v1361_v3 = vadd.f32 1.0, %v2240_v36 }
 0x174   :  { %v2244_v43 = vpop.eup %2243  ;;  %2269 = vpow2.f32 %v1880_v41  ;;  %v1363_v8 = vadd.f32 1.0, %v2242_v40 }
 0x175   :  { %v2952_v46 = vpop.eup %2245  ;;  %v2954_v48 = vpop.f32.mrb[16].mxu0  ;;  %2271 = vpow2.f32 %v1882_v44  ;;  %v1364_v12 = vadd.f32 1.0, %v2244_v43 }
 0x176   :  { %v2956_v49 = vpop.f32.mrb[16].mxu1  ;;  %v2958_v50 = vpop.eup %2247  ;;  %2273 = vpow2.f32 %v1881_v47 }
 0x177   :  { %v2960_v52 = vpop.f32.mrb[17].mxu0  ;;  %v2962_v53 = vpop.f32.mrb[17].mxu1  ;;  %2275 = vpow2.f32 %v1883_v51  ;;  %v1925_v51 = vadd.f32 %v2940_v1, %v197_v4  ;;  %v1926_v1 = vadd.f32 %v2944_v27, %v202_v42 }
 0x178   :  { %v2964_v54 = vpop.eup %2249  ;;  %v2966_v56 = vpop.f32.mrb[18].mxu0  ;;  %2277 = vpow2.f32 %v1884_v55 }
 0x179   :  { %v2968_v57 = vpop.f32.mrb[18].mxu1  ;;  %v2970_v58 = vpop.eup %2251  ;;  %2279 = vpow2.f32 %v1886_v59 }
 0x17a   :  { %v2972_v60 = vpop.f32.mrb[19].mxu0  ;;  %v2974_v61 = vpop.f32.mrb[19].mxu1  ;;  %2281 = vrcp.f32 %v1362_v63 }
 0x17b   :  { %v2976_v62 = vpop.eup %2253  ;;  %2283 = vrcp.f32 %v1361_v3  ;;  %v1957_v3 = vadd.f32 %v2942_v26, %v197_v4  ;;  %v1958_v26 = vadd.f32 %v2946_v30, %v202_v42  ;;  %v207_v27 = vpop.permute.xlu0 %206 }
 0x17c   :  { %v2979_v2 = vpop.eup %2255  ;;  %2285 = vrcp.f32 %v1363_v8 }
 0x17d   :  { %v2982_v7 = vpop.eup %2257  ;;  %v2990_v15 = vpop.f32.mrb[20].mxu0  ;;  %2287 = vrcp.f32 %v1364_v12 }
 0x17e   :  { %v2985_v11 = vpop.eup %2259  ;;  %v2992_v16 = vpop.f32.mrb[20].mxu1  ;;  %2289 = vpow2.f32 %v1885_v14 }
 0x17f   :  { %v2988_v6 = vpop.eup %2261  ;;  %v2994_v18 = vpop.f32.mrb[21].mxu0  ;;  %2291 = vpow2.f32 %v1887_v17 }
 0x180   :  { %v2264_v9 = vpop.eup %2263  ;;  %v2996_v19 = vpop.f32.mrb[21].mxu1  ;;  %2293 = vpow2.f32 %v1888_v21  ;;  %v1889_v21 = vmul.f32 -1.442695, %v1925_v51 }
 0x181   :  { %v2266_v20 = vpop.eup %2265  ;;  %v2998_v22 = vpop.f32.mrb[22].mxu0  ;;  %v1366_v32 = vadd.f32 1.0, %v2264_v9  ;;  %2295 = vpow2.f32 %v1890_v25 }
 0x182   :  { %v3000_v23 = vpop.f32.mrb[22].mxu1  ;;  %v2268_v24 = vpop.eup %2267  ;;  %v1365_v36 = vadd.f32 1.0, %v2266_v20 }
 0x183   :  { %v3002_v28 = vpop.f32.mrb[23].mxu0  ;;  %v2270_v29 = vpop.eup %2269  ;;  %v1367_v38 = vadd.f32 1.0, %v2268_v24  ;;  %2297 = vrcp.f32 %v1366_v32  ;;  %v1927_v24 = vadd.f32 %v2948_v31, %v202_v42  ;;  %v1959_v32 = vadd.f32 %v2950_v35, %v202_v42 }
 0x184   :  { %v3004_v33 = vpop.f32.mrb[23].mxu1  ;;  %v2272_v34 = vpop.eup %2271  ;;  %v1448_v40 = vadd.f32 1.0, %v2270_v29  ;;  %2299 = vrcp.f32 %v1365_v36  ;;  %v1891_v29 = vmul.f32 -1.442695, %v1957_v3  ;;  %v1892_v36 = vmul.f32 -1.442695, %v1926_v1 }
 0x185   :  { %v2274_v37 = vpop.eup %2273  ;;  %v1450_v43 = vadd.f32 1.0, %v2272_v34  ;;  %v3006_v44 = vpop.f32.mrb[24].mxu0  ;;  %2301 = vrcp.f32 %v1367_v38  ;;  %v1894_v38 = vmul.f32 -1.442695, %v1958_v26 }
 0x186   :  { %v2276_v39 = vpop.eup %2275  ;;  %v1449_v47 = vadd.f32 1.0, %v2274_v37  ;;  %v3009_v55 = vpop.f32.mrb[24].mxu1  ;;  %2303 = vrcp.f32 %v1448_v40  ;;  %v1928_v37 = vadd.f32 %v2954_v48, %v207_v27  ;;  %v1895_v48 = vmul.f32 -1.442695, %v1959_v32 }
 0x187   :  { %v2278_v41 = vpop.eup %2277  ;;  %v3011_v59 = vpop.f32.mrb[25].mxu0  ;;  %v1451_v0 = vadd.f32 1.0, %v2276_v39  ;;  %2305 = vrcp.f32 %v1450_v43  ;;  %v1960_v39 = vadd.f32 %v2956_v49, %v207_v27  ;;  %v1893_v43 = vmul.f32 -1.442695, %v1927_v24 }
 0x188   :  { %v2280_v45 = vpop.eup %2279  ;;  %v3016_v5 = vpop.f32.mrb[25].mxu1  ;;  %v1452_v12 = vadd.f32 1.0, %v2278_v41  ;;  %2307 = vrcp.f32 %v1449_v47  ;;  %v1896_v3 = vmul.f32 -1.442695, %v1928_v37 }
 0x189   :  { %v3013_v63 = vpop.eup %2281  ;;  %v3018_v8 = vpop.f32.mrb[26].mxu0  ;;  %v1454_v17 = vadd.f32 1.0, %v2280_v45  ;;  %2309 = vrcp.f32 %v1451_v0  ;;  %v1929_v45 = vadd.f32 %v2960_v52, %v207_v27 }
 0x18a   :  { %v3020_v10 = vpop.eup %2283  ;;  %v3023_v13 = vpop.f32.mrb[26].mxu1  ;;  %2311 = vrcp.f32 %v1452_v12 }
 0x18b   :  { %v3025_v14 = vpop.f32.mrb[27].mxu0  ;;  %v3027_v9 = vpop.eup %2285  ;;  %2313 = vrcp.f32 %v1454_v17  ;;  %v1898_v17 = vmul.f32 -1.442695, %v1960_v39 }
 0x18c   :  { %3343 = vst [vmem:[#allocation2_spill] sm:$0xff] %v3027_v9  ;;  %v3030_v4 = vpop.f32.mrb[27].mxu1  ;;  %v3032_v20 = vpop.eup %2287  ;;  %2315 = vpow2.f32 %v1889_v21  ;;  %v1897_v21 = vmul.f32 -1.442695, %v1929_v45 }
 0x18d   :  { %3344 = vst [vmem:[#allocation3_spill] sm:$0xff] %v3032_v20  ;;  %v2290_v25 = vpop.eup %2289  ;;  %v3038_v40 = vpop.f32.mrb[28].mxu0  ;;  %2317 = vpow2.f32 %v1891_v29 }
 0x18e   :  { %v2292_v34 = vpop.eup %2291  ;;  %v3040_v41 = vpop.f32.mrb[28].mxu1  ;;  %2319 = vpow2.f32 %v1892_v36  ;;  %v1453_v29 = vadd.f32 1.0, %v2290_v25  ;;  %v1961_v36 = vadd.f32 %v2962_v53, %v207_v27 }
 0x18f   :  { %v2294_v30 = vpop.eup %2293  ;;  %v3043_v35 = vpop.f32.mrb[29].mxu0  ;;  %2321 = vpow2.f32 %v1894_v38 }
 0x190   :  { %v2296_v31 = vpop.eup %2295  ;;  %v3045_v42 = vpop.f32.mrb[29].mxu1  ;;  %2323 = vpow2.f32 %v1893_v43  ;;  %v1456_v38 = vadd.f32 1.0, %v2294_v30  ;;  %v1899_v53 = vmul.f32 -1.442695, %v1961_v36 }
 0x191   :  { %v3047_v47 = vpop.eup %2297  ;;  %v3049_v51 = vpop.f32.mrb[30].mxu0  ;;  %2325 = vpow2.f32 %v1895_v48  ;;  %v1458_v45 = vadd.f32 1.0, %v2296_v31 }
 0x192   :  { %3345 = vst [vmem:[#allocation4_spill] sm:$0xff] %v3047_v47  ;;  %v3051_v49 = vpop.f32.mrb[30].mxu1  ;;  %v3053_v0 = vpop.eup %2299  ;;  %2327 = vpow2.f32 %v1896_v3 }
 0x193   :  { %3346 = vst [vmem:[#allocation5_spill] sm:$0xff] %v3053_v0  ;;  %v3055_v12 = vpop.f32.mrb[31].mxu0  ;;  %v3057_v1 = vpop.f32.mrb[31].mxu1  ;;  %v1455_v0 = vadd.f32 1.0, %v2292_v34  ;;  %2329 = vpow2.f32 %v1898_v17 }
 0x194   :  { %v3059_v52 = vpop.eup %2301  ;;  %v212_v32 = vpop.permute.xlu1 %211  ;;  %2331 = vpow2.f32 %v1897_v21 }
 0x195   :  { %3347 = vst [vmem:[#allocation6_spill] sm:$0xff] %v3059_v52  ;;  %v3061_v26 = vpop.eup %2303  ;;  %v1930_v47 = vadd.f32 %v2966_v56, %v212_v32  ;;  %v1962_v39 = vadd.f32 %v2968_v57, %v212_v32  ;;  %v1931_v25 = vadd.f32 %v2972_v60, %v212_v32  ;;  %2333 = vrcp.f32 %v1453_v29 }
 0x196   :  { %v3063_v24 = vpop.eup %2305  ;;  %2335 = vrcp.f32 %v1455_v0 }
 0x197   :  { %v3066_v37 = vpop.eup %2307  ;;  %v1900_v34 = vmul.f32 -1.442695, %v1930_v47  ;;  %2337 = vrcp.f32 %v1456_v38  ;;  %v1902_v3 = vmul.f32 -1.442695, %v1962_v39  ;;  %v1901_v17 = vmul.f32 -1.442695, %v1931_v25  ;;  %v217_v39 = vpop.permute.xlu0 %216 }
 0x198   :  { %v3069_v52 = vpop.eup %2309  ;;  %2339 = vrcp.f32 %v1458_v45  ;;  %v1963_v25 = vadd.f32 %v2974_v61, %v212_v32 }
 0x199   :  { %v3072_v43 = vpop.eup %2311  ;;  %2341 = vpow2.f32 %v1899_v53 }
 0x19a   :  { %v3075_v48 = vpop.eup %2313  ;;  %2343 = vpow2.f32 %v1900_v34  ;;  %v1932_v34 = vadd.f32 %v2990_v15, %v217_v39  ;;  %v1903_v61 = vmul.f32 -1.442695, %v1963_v25 }
 0x19b   :  { %v2316_v27 = vpop.eup %2315  ;;  %2345 = vpow2.f32 %v1902_v3 }
 0x19c   :  { %v2318_v56 = vpop.eup %2317  ;;  %v1457_v20 = vadd.f32 1.0, %v2316_v27  ;;  %2347 = vpow2.f32 %v1901_v17  ;;  %v1904_v15 = vmul.f32 -1.442695, %v1932_v34  ;;  %v227_v34 = vpop.permute.xlu0 %226 }
 0x19d   :  { %v2320_v30 = vpop.eup %2319  ;;  %v1459_v21 = vadd.f32 1.0, %v2318_v56 }
 0x19e   :  { %v2322_v57 = vpop.eup %2321  ;;  %v1460_v9 = vadd.f32 1.0, %v2320_v30  ;;  %2349 = vrcp.f32 %v1457_v20  ;;  %v1964_v30 = vadd.f32 %v2992_v16, %v217_v39 }
 0x19f   :  { %v2324_v31 = vpop.eup %2323  ;;  %v1462_v36 = vadd.f32 1.0, %v2322_v57  ;;  %2351 = vrcp.f32 %v1459_v21  ;;  %v1933_v57 = vadd.f32 %v2994_v18, %v217_v39 }
 0x1a0   :  { %v2326_v60 = vpop.eup %2325  ;;  %v1461_v47 = vadd.f32 1.0, %v2324_v31  ;;  %2353 = vrcp.f32 %v1460_v9  ;;  %v1965_v9 = vadd.f32 %v2996_v19, %v217_v39 }
 0x1a1   :  { %v2328_v29 = vpop.eup %2327  ;;  %v1463_v45 = vadd.f32 1.0, %v2326_v60  ;;  %2355 = vrcp.f32 %v1462_v36  ;;  %v1906_v60 = vmul.f32 -1.442695, %v1964_v30  ;;  %v1905_v16 = vmul.f32 -1.442695, %v1933_v57 }
 0x1a2   :  { %v2330_v0 = vpop.eup %2329  ;;  %v1544_v53 = vadd.f32 1.0, %v2328_v29  ;;  %2357 = vrcp.f32 %v1461_v47  ;;  %v1936_v57 = vadd.f32 %v3006_v44, %v227_v34  ;;  %v1969_v44 = vadd.f32 %v3016_v5, %v227_v34 }
 0x1a3   :  { %v2332_v38 = vpop.eup %2331  ;;  %v1546_v3 = vadd.f32 1.0, %v2330_v0  ;;  %2359 = vrcp.f32 %v1463_v45  ;;  %v1907_v0 = vmul.f32 -1.442695, %v1965_v9 }
 0x1a4   :  { %v3078_v27 = vpop.eup %2333  ;;  %v1545_v17 = vadd.f32 1.0, %v2332_v38  ;;  %2361 = vrcp.f32 %v1544_v53  ;;  %v222_v53 = vpop.permute.xlu1 %221 }
 0x1a5   :  { %v3081_v56 = vpop.eup %2335  ;;  %2363 = vrcp.f32 %v1546_v3  ;;  %v1966_v9 = vadd.f32 %v3000_v23, %v222_v53 }
 0x1a6   :  { %v3084_v20 = vpop.eup %2337  ;;  %2365 = vrcp.f32 %v1545_v17  ;;  %v1934_v17 = vadd.f32 %v2998_v22, %v222_v53  ;;  %v1967_v22 = vadd.f32 %v3004_v33, %v222_v53 }
 0x1a7   :  { %v3087_v31 = vpop.eup %2339  ;;  %2367 = vpow2.f32 %v1903_v61 }
 0x1a8   :  { %v2342_v32 = vpop.eup %2341  ;;  %2369 = vpow2.f32 %v1904_v15 }
 0x1a9   :  { %v2344_v21 = vpop.eup %2343  ;;  %v1547_v18 = vadd.f32 1.0, %v2342_v32  ;;  %2371 = vpow2.f32 %v1906_v60  ;;  %v1968_v32 = vadd.f32 %v3009_v55, %v227_v34  ;;  %v1937_v60 = vadd.f32 %v3011_v59, %v227_v34 }
 0x1aa   :  { %v2346_v29 = vpop.eup %2345  ;;  %v1548_v45 = vadd.f32 1.0, %v2344_v21  ;;  %2373 = vpow2.f32 %v1905_v16  ;;  %v1935_v21 = vadd.f32 %v3002_v28, %v222_v53  ;;  %v1910_v55 = vmul.f32 -1.442695, %v1966_v9  ;;  %v1608_v9 = vld [vmem:[%s3340_s3] sm:$0xff] }
 0x1ab   :  { %v2348_v36 = vpop.eup %2347  ;;  %v1550_v39 = vadd.f32 1.0, %v2346_v29  ;;  %2375 = vpow2.f32 %v1907_v0 }
 0x1ac   :  { %v3090_v47 = vpop.eup %2349  ;;  %v1549_v3 = vadd.f32 1.0, %v2348_v36  ;;  %2377 = vrcp.f32 %v1547_v18  ;;  %v1908_v36 = vmul.f32 -1.442695, %v1934_v17  ;;  %v1909_v18 = vmul.f32 -1.442695, %v1935_v21 }
 0x1ad   :  { %v3092_v38 = vpop.eup %2351  ;;  %2379 = vrcp.f32 %v1548_v45  ;;  %v1911_v45 = vmul.f32 -1.442695, %v1967_v22  ;;  %v1610_v22 = vld [vmem:[%s3340_s3 + $0x10] sm:$0xff] }
 0x1ae   :  { %v3094_v19 = vpop.eup %2353  ;;  %2381 = vrcp.f32 %v1550_v39 }
 0x1af   :  { %v3096_v25 = vpop.eup %2355  ;;  %2383 = vrcp.f32 %v1549_v3 }
 0x1b0   :  { %v3098_v30 = vpop.eup %2357  ;;  %2385 = vtanh.f32 %v1936_v57 }
 0x1b1   :  { %v3102_v61 = vpop.eup %2359  ;;  %2387 = vtanh.f32 %v1968_v32  ;;  %v232_v32 = vpop.permute.xlu1 %231 }
 0x1b2   :  { %v3106_v15 = vpop.eup %2361  ;;  %2389 = vtanh.f32 %v1937_v60 }
 0x1b3   :  { %v3110_v29 = vpop.eup %2363  ;;  %2391 = vtanh.f32 %v1969_v44  ;;  %v1938_v44 = vadd.f32 %v3018_v8, %v232_v32  ;;  %v1626_v8 = vmul.f32 %v3063_v24, %v1610_v22  ;;  %v1939_v24 = vadd.f32 %v3025_v14, %v232_v32 }
 0x1b4   :  { %v3114_v16 = vpop.eup %2365  ;;  %2393 = vpow2.f32 %v1908_v36 }
 0x1b5   :  { %v2368_v23 = vpop.eup %2367  ;;  %2395 = vpow2.f32 %v1910_v55  ;;  %v1970_v55 = vadd.f32 %v3023_v13, %v232_v32 }
 0x1b6   :  { %v2370_v0 = vpop.eup %2369  ;;  %v1551_v39 = vadd.f32 1.0, %v2368_v23  ;;  %2397 = vpow2.f32 %v1909_v18  ;;  %v1609_v23 = vld [vmem:[%s3340_s3 + $0x8] sm:$0xff]  ;;  %v1624_v18 = vmul.f32 %v3061_v26, %v1608_v9 }
 0x1b7   :  { %v2372_v28 = vpop.eup %2371  ;;  %v1552_v33 = vadd.f32 1.0, %v2370_v0  ;;  %2399 = vpow2.f32 %v1911_v45 }
 0x1b8   :  { %v2374_v59 = vpop.eup %2373  ;;  %v1554_v53 = vadd.f32 1.0, %v2372_v28  ;;  %2401 = vrcp.f32 %v1551_v39  ;;  %v1611_v28 = vld [vmem:[%s3340_s3 + $0x18] sm:$0xff] }
 0x1b9   :  { %v2376_v3 = vpop.eup %2375  ;;  %v1553_v17 = vadd.f32 1.0, %v2374_v59  ;;  %2403 = vrcp.f32 %v1552_v33  ;;  %v1625_v33 = vmul.f32 %v3066_v37, %v1609_v23  ;;  %v1627_v9 = vmul.f32 %v3069_v52, %v1611_v28 }
 0x1ba   :  { %v3116_v5 = vpop.eup %2377  ;;  %v1555_v21 = vadd.f32 1.0, %v2376_v3  ;;  %2405 = vrcp.f32 %v1554_v53 }
 0x1bb   :  { %v3118_v34 = vpop.eup %2379  ;;  %2407 = vrcp.f32 %v1553_v17 }
 0x1bc   :  { %v3120_v57 = vpop.eup %2381  ;;  %2409 = vrcp.f32 %v1555_v21  ;;  %v237_v21 = vpop.permute.xlu0 %236 }
 0x1bd   :  { %v3125_v60 = vpop.eup %2383  ;;  %2411 = vtanh.f32 %v1938_v44  ;;  %v1940_v22 = vadd.f32 %v3038_v40, %v237_v21  ;;  %v1973_v40 = vadd.f32 %v3045_v42, %v237_v21 }
 0x1be   :  { %3348 = vst [vmem:[#allocation7_spill] sm:$0xff] %v3125_v60  ;;  %v2386_v36 = vpop.eup %2385  ;;  %2413 = vtanh.f32 %v1970_v55  ;;  %v1612_v55 = vld [vmem:[%s3340_s3 + $0x20] sm:$0xff] }
 0x1bf   :  { %v2388_v0 = vpop.eup %2387  ;;  %v1640_v45 = vmul.f32 %v2386_v36, %v2952_v46  ;;  %v242_v36 = vpop.permute.xlu1 %241 }
 0x1c0   :  { %v2390_v59 = vpop.eup %2389  ;;  %v1642_v39 = vmul.f32 %v2388_v0, %v2958_v50  ;;  %v1943_v42 = vadd.f32 %v3055_v12, %v242_v36 }
 0x1c1   :  { %v2392_v3 = vpop.eup %2391  ;;  %v1656_v13 = vadd.f32 %v1640_v45, %v1624_v18  ;;  %v1641_v53 = vmul.f32 %v2390_v59, %v2964_v54  ;;  %v1974_v18 = vadd.f32 %v3051_v49, %v242_v36  ;;  %v1628_v59 = vmul.f32 %v3072_v43, %v1612_v55  ;;  %v1613_v43 = vld [vmem:[%s3340_s3 + $0x28] sm:$0xff]  ;;  %v1620_v55 = vld [vmem:[%s3340_s3 + $0x60] sm:$0xff] }
 0x1c2   :  { %v2394_v26 = vpop.eup %2393  ;;  %v1658_v60 = vadd.f32 %v1642_v39, %v1626_v8  ;;  %v1643_v17 = vmul.f32 %v2392_v3, %v2970_v58  ;;  %v1971_v58 = vadd.f32 %v3030_v4, %v232_v32  ;;  %v1941_v4 = vadd.f32 %v3043_v35, %v237_v21  ;;  %v1614_v35 = vld [vmem:[%s3340_s3 + $0x30] sm:$0xff] }
 0x1c3   :  { %v2396_v46 = vpop.eup %2395  ;;  %2415 = vtanh.f32 %v1656_v13  ;;  %1720 = vst [vmem:[%s3341_s5] sm:$0xff] %v1656_v13  ;;  %v1657_v50 = vadd.f32 %v1641_v53, %v1625_v33  ;;  %v1630_v39 = vmul.f32 %v3075_v48, %v1614_v35  ;;  %v1975_v53 = vadd.f32 %v3057_v1, %v242_v36 }
 0x1c4   :  { %v2398_v37 = vpop.eup %2397  ;;  %2417 = vtanh.f32 %v1658_v60  ;;  %1722 = vst [vmem:[%s3341_s5 + $0x10] sm:$0xff] %v1658_v60  ;;  %v1659_v54 = vadd.f32 %v1643_v17, %v1627_v9  ;;  %v1972_v60 = vadd.f32 %v3040_v41, %v237_v21  ;;  %v1942_v41 = vadd.f32 %v3049_v51, %v242_v36  ;;  %v1618_v21 = vld [vmem:[%s3340_s3 + $0x50] sm:$0xff] }
 0x1c5   :  { %v3154_v52 = vpop.eup %2399  ;;  %2419 = vtanh.f32 %v1657_v50  ;;  %1721 = vst [vmem:[%s3341_s5 + $0x8] sm:$0xff] %v1657_v50  ;;  %v1557_v50 = vadd.f32 1.0, %v2398_v37 }
 0x1c6   :  { %v3160_v14 = vpop.eup %2401  ;;  %2421 = vtanh.f32 %v1659_v54  ;;  %1723 = vst [vmem:[%s3341_s5 + $0x18] sm:$0xff] %v1659_v54 }
 0x1c7   :  { %v3166_v44 = vpop.eup %2403  ;;  %2423 = vtanh.f32 %v1939_v24  ;;  %v1629_v24 = vmul.f32 %v3078_v27, %v1613_v43  ;;  %v1623_v43 = vld [vmem:[%s3340_s3 + $0x78] sm:$0xff] }
 0x1c8   :  { %v3169_v32 = vpop.eup %2405  ;;  %2425 = vtanh.f32 %v1971_v58  ;;  %v1617_v58 = vld [vmem:[%s3340_s3 + $0x48] sm:$0xff] }
 0x1c9   :  { %v3172_v23 = vpop.eup %2407  ;;  %2427 = vtanh.f32 %v1940_v22  ;;  %v1633_v35 = vmul.f32 %v3090_v47, %v1617_v58 }
 0x1ca   :  { %v3178_v0 = vpop.eup %2409  ;;  %2429 = vtanh.f32 %v1972_v60 }
 0x1cb   :  { %v2412_v28 = vpop.eup %2411  ;;  %2431 = vtanh.f32 %v1941_v4 }
 0x1cc   :  { %v2414_v45 = vpop.eup %2413  ;;  %v1644_v8 = vmul.f32 %v2412_v28, %v2976_v62  ;;  %2433 = vtanh.f32 %v1973_v40  ;;  %v1556_v62 = vadd.f32 1.0, %v2394_v26  ;;  %v1616_v26 = vld [vmem:[%s3340_s3 + $0x40] sm:$0xff]  ;;  %v1634_v40 = vmul.f32 %v3087_v31, %v1618_v21  ;;  %v3354_v21 = vld [vmem:[#allocation7_spill] sm:$0xff] }
 0x1cd   :  { %v2416_v51 = vpop.eup %2415  ;;  %v1646_v3 = vmul.f32 %v2414_v45, %v2979_v2  ;;  %2435 = vtanh.f32 %v1942_v41  ;;  %v1615_v2 = vld [vmem:[%s3340_s3 + $0x38] sm:$0xff]  ;;  %v1632_v60 = vmul.f32 %v3084_v20, %v1616_v26  ;;  %v3349_v45 = vld [vmem:[#allocation2_spill] sm:$0xff] }
 0x1ce   :  { %v2418_v33 = vpop.eup %2417  ;;  %v1688_v13 = vmul.f32 %v2416_v51, %v3106_v15  ;;  %v1660_v49 = vadd.f32 %v1644_v8, %v1628_v59  ;;  %2437 = vtanh.f32 %v1974_v18  ;;  %v1558_v15 = vadd.f32 1.0, %v2396_v46  ;;  %v1622_v18 = vld [vmem:[%s3340_s3 + $0x70] sm:$0xff] }
 0x1cf   :  { %v2420_v12 = vpop.eup %2419  ;;  %v1690_v9 = vmul.f32 %v2418_v33, %v3110_v29  ;;  %v1662_v17 = vadd.f32 %v1646_v3, %v1630_v39  ;;  %2439 = vtanh.f32 %v1943_v42  ;;  %v1631_v54 = vmul.f32 %v3081_v56, %v1615_v2 }
 0x1d0   :  { %v2422_v48 = vpop.eup %2421  ;;  %1704 = vst [vmem:[%s3342_s4] sm:$0xff] %v1688_v13  ;;  %v1689_v1 = vmul.f32 %v2420_v12, %v3114_v16  ;;  %2441 = vtanh.f32 %v1660_v49  ;;  %1724 = vst [vmem:[%s3341_s5 + $0x20] sm:$0xff] %v1660_v49  ;;  %v1636_v51 = vmul.f32 %v3094_v19, %v1620_v55  ;;  %v1638_v33 = vmul.f32 %v3096_v25, %v1622_v18  ;;  %v3351_v49 = vld [vmem:[#allocation4_spill] sm:$0xff] }
 0x1d1   :  { %v2424_v29 = vpop.eup %2423  ;;  %1706 = vst [vmem:[%s3342_s4 + $0x10] sm:$0xff] %v1690_v9  ;;  %v1691_v46 = vmul.f32 %v2422_v48, %v3116_v5  ;;  %2443 = vtanh.f32 %v1662_v17  ;;  %1726 = vst [vmem:[%s3341_s5 + $0x30] sm:$0xff] %v1662_v17 }
 0x1d2   :  { %v2426_v16 = vpop.eup %2425  ;;  %1705 = vst [vmem:[%s3342_s4 + $0x8] sm:$0xff] %v1689_v1  ;;  %v1645_v37 = vmul.f32 %v2424_v29, %v2982_v7  ;;  %2445 = vtanh.f32 %v1975_v53  ;;  %v1619_v7 = vld [vmem:[%s3340_s3 + $0x58] sm:$0xff] }
 0x1d3   :  { %v2428_v5 = vpop.eup %2427  ;;  %2447 = vrcp.f32 %v1556_v62  ;;  %1707 = vst [vmem:[%s3342_s4 + $0x18] sm:$0xff] %v1691_v46  ;;  %v1647_v27 = vmul.f32 %v2426_v16, %v2985_v11  ;;  %v1635_v42 = vmul.f32 %v3092_v38, %v1619_v7  ;;  %v3350_v38 = vld [vmem:[#allocation3_spill] sm:$0xff]  ;;  %v3352_v62 = vld [vmem:[#allocation5_spill] sm:$0xff] }
 0x1d4   :  { %v2430_v22 = vpop.eup %2429  ;;  %2449 = vrcp.f32 %v1558_v15  ;;  %v1661_v56 = vadd.f32 %v1645_v37, %v1629_v24  ;;  %v1648_v4 = vmul.f32 %v2428_v5, %v2988_v6  ;;  %v1559_v15 = vadd.f32 1.0, %v3154_v52  ;;  %v3353_v52 = vld [vmem:[#allocation6_spill] sm:$0xff] }
 0x1d5   :  { %v2432_v36 = vpop.eup %2431  ;;  %2451 = vrcp.f32 %v1557_v50  ;;  %v1663_v11 = vadd.f32 %v1647_v27, %v1631_v54  ;;  %v1650_v41 = vmul.f32 %v2430_v22, %v3013_v63  ;;  %v1621_v63 = vld [vmem:[%s3340_s3 + $0x68] sm:$0xff] }
 0x1d6   :  { %v2434_v20 = vpop.eup %2433  ;;  %2453 = vtanh.f32 %v1661_v56  ;;  %1725 = vst [vmem:[%s3341_s5 + $0x28] sm:$0xff] %v1661_v56  ;;  %v1664_v6 = vadd.f32 %v1648_v4, %v1632_v60  ;;  %v1649_v31 = vmul.f32 %v2432_v36, %v3020_v10  ;;  %v1637_v12 = vmul.f32 %v3098_v30, %v1621_v63 }
 0x1d7   :  { %v2436_v28 = vpop.eup %2435  ;;  %2455 = vtanh.f32 %v1663_v11  ;;  %1727 = vst [vmem:[%s3341_s5 + $0x38] sm:$0xff] %v1663_v11  ;;  %v1666_v47 = vadd.f32 %v1650_v41, %v1634_v40  ;;  %v1651_v59 = vmul.f32 %v2434_v20, %v3349_v45 }
 0x1d8   :  { %v2438_v8 = vpop.eup %2437  ;;  %2457 = vtanh.f32 %v1664_v6  ;;  %1728 = vst [vmem:[%s3341_s5 + $0x40] sm:$0xff] %v1664_v6  ;;  %v1665_v10 = vadd.f32 %v1649_v31, %v1633_v35  ;;  %v1652_v39 = vmul.f32 %v2436_v28, %v3350_v38 }
 0x1d9   :  { %v2440_v3 = vpop.eup %2439  ;;  %2459 = vtanh.f32 %v1666_v47  ;;  %1730 = vst [vmem:[%s3341_s5 + $0x50] sm:$0xff] %v1666_v47  ;;  %v1667_v13 = vadd.f32 %v1651_v59, %v1635_v42  ;;  %v1654_v53 = vmul.f32 %v2438_v8, %v3351_v49 }
 0x1da   :  { %v2442_v19 = vpop.eup %2441  ;;  %2461 = vtanh.f32 %v1665_v10  ;;  %1729 = vst [vmem:[%s3341_s5 + $0x48] sm:$0xff] %v1665_v10  ;;  %v1668_v25 = vadd.f32 %v1652_v39, %v1636_v51  ;;  %v1653_v9 = vmul.f32 %v2440_v3, %v3352_v62 }
 0x1db   :  { %v2444_v17 = vpop.eup %2443  ;;  %v1692_v48 = vmul.f32 %v2442_v19, %v3118_v34  ;;  %2463 = vtanh.f32 %v1667_v13  ;;  %1731 = vst [vmem:[%s3341_s5 + $0x58] sm:$0xff] %v1667_v13  ;;  %v1670_v30 = vadd.f32 %v1654_v53, %v1638_v33  ;;  %v1639_v34 = vmul.f32 %v3102_v61, %v1623_v43 }
 0x1dc   :  { %v2446_v2 = vpop.eup %2445  ;;  %v1694_v1 = vmul.f32 %v2444_v17, %v3120_v57  ;;  %2465 = vtanh.f32 %v1668_v25  ;;  %1732 = vst [vmem:[%s3341_s5 + $0x60] sm:$0xff] %v1668_v25  ;;  %v1669_v29 = vadd.f32 %v1653_v9, %v1637_v12 }
 0x1dd   :  { %v2448_v26 = vpop.eup %2447  ;;  %1708 = vst [vmem:[%s3342_s4 + $0x20] sm:$0xff] %v1692_v48  ;;  %2467 = vtanh.f32 %v1670_v30  ;;  %1734 = vst [vmem:[%s3341_s5 + $0x70] sm:$0xff] %v1670_v30  ;;  %v1655_v57 = vmul.f32 %v2446_v2, %v3353_v52 }
 0x1de   :  { %v2450_v50 = vpop.eup %2449  ;;  %1710 = vst [vmem:[%s3342_s4 + $0x30] sm:$0xff] %v1694_v1  ;;  %2469 = vtanh.f32 %v1669_v29  ;;  %1733 = vst [vmem:[%s3341_s5 + $0x68] sm:$0xff] %v1669_v29 }
 0x1df   :  { %v2452_v61 = vpop.eup %2451  ;;  %v1671_v46 = vadd.f32 %v1655_v57, %v1639_v34  ;;  %2471 = vrcp.f32 %v1559_v15 }
 0x1e0   :  { %v2454_v16 = vpop.eup %2453 }
 0x1e1   :  { %v2456_v24 = vpop.eup %2455  ;;  %v1693_v37 = vmul.f32 %v2454_v16, %v3354_v21  ;;  %2473 = vtanh.f32 %v1671_v46  ;;  %1735 = vst [vmem:[%s3341_s5 + $0x78] sm:$0xff] %v1671_v46 }
 0x1e2   :  { %v2458_v5 = vpop.eup %2457  ;;  %v1695_v54 = vmul.f32 %v2456_v24, %v3160_v14 }
 0x1e3   :  { %v2460_v58 = vpop.eup %2459  ;;  %1709 = vst [vmem:[%s3342_s4 + $0x28] sm:$0xff] %v1693_v37  ;;  %v1696_v27 = vmul.f32 %v2458_v5, %v3166_v44 }
 0x1e4   :  { %v2462_v22 = vpop.eup %2461  ;;  %1711 = vst [vmem:[%s3342_s4 + $0x38] sm:$0xff] %v1695_v54  ;;  %v1698_v60 = vmul.f32 %v2460_v58, %v3169_v32 }
 0x1e5   :  { %v2464_v7 = vpop.eup %2463  ;;  %1712 = vst [vmem:[%s3342_s4 + $0x40] sm:$0xff] %v1696_v27  ;;  %v1697_v14 = vmul.f32 %v2462_v22, %v3172_v23 }
 0x1e6   :  { %v2466_v56 = vpop.eup %2465  ;;  %1714 = vst [vmem:[%s3342_s4 + $0x50] sm:$0xff] %v1698_v60  ;;  %v1699_v44 = vmul.f32 %v2464_v7, %v3178_v0 }
 0x1e7   :  { %v2468_v4 = vpop.eup %2467  ;;  %1713 = vst [vmem:[%s3342_s4 + $0x48] sm:$0xff] %v1697_v14  ;;  %v1700_v32 = vmul.f32 %v2466_v56, %v2448_v26 }
 0x1e8   :  { %v2470_v36 = vpop.eup %2469  ;;  %1715 = vst [vmem:[%s3342_s4 + $0x58] sm:$0xff] %v1699_v44  ;;  %v1702_v40 = vmul.f32 %v2468_v4, %v2450_v50 }
 0x1e9   :  { %1716 = vst [vmem:[%s3342_s4 + $0x60] sm:$0xff] %v1700_v32  ;;  %v1701_v23 = vmul.f32 %v2470_v36, %v2452_v61  ;;  %v2472_v55 = vpop.eup %2471 }
 0x1ea   :  { %1718 = vst [vmem:[%s3342_s4 + $0x70] sm:$0xff] %v1702_v40 }
 0x1eb   :  { %v2474_v0 = vpop.eup %2473  ;;  %1717 = vst [vmem:[%s3342_s4 + $0x68] sm:$0xff] %v1701_v23 }
 0x1ec   :  { %v1703_v11 = vmul.f32 %v2474_v0, %v2472_v55 }
 0x1ee   :  { %1719 = vst [vmem:[%s3342_s4 + $0x78] sm:$0xff] %v1703_v11 }

</bundles_post_ra>
